<compile_context>
chip_gen: v7x
topology: tpu7x:2x2x1
jax: 0.10.0
libtpu: 0.0.40
codegen_flags: <defaults>
</compile_context>

<pallas_src>
import functools

import jax
import jax.numpy as jnp
from jax.experimental import pallas as pl
from jax.experimental.pallas import tpu as pltpu

_MIB = 1024 * 1024


def _vmem_capacity_bytes():
    """Per-TensorCore VMEM capacity; conservative 64 MiB (v7x) fallback."""
    try:
        info = pltpu.get_tpu_info()
        cap = getattr(info, "vmem_capacity_bytes", None)
        if cap:
            return int(cap)
    except Exception:
        pass
    return 64 * _MIB


def _largest_divisor_leq(n, cap):
    cap = max(1, min(n, cap))
    for d in range(cap, 0, -1):
        if n % d == 0:
            return d
    return 1


# --------------------------- fused single-pass kernel ------------------------
def _se_kernel(x_ref, w1t_ref, b1_ref, w2t_ref, b2_ref, o_ref, *, inv_hw):
    # x_ref  : (TB, C, HW)  native dtype
    # w1t_ref: (C, C_red)   fc1 weight, pre-transposed
    # b1_ref : (1, C_red)
    # w2t_ref: (C_red, C)   fc2 weight, pre-transposed
    # b2_ref : (1, C)
    x = x_ref[...]                                             # (TB, C, HW)

    # squeeze: global average pool over the spatial (lane) axis, f32 accumulate
    squeeze = jnp.sum(x, axis=-1, dtype=jnp.float32) * inv_hw  # (TB, C)

    # excitation MLP in f32 on the MXU (M = TB rows)
    h = jnp.dot(squeeze, w1t_ref[...], preferred_element_type=jnp.float32)
    h = jnp.maximum(h + b1_ref[...], 0.0)                      # ReLU
    s = jnp.dot(h, w2t_ref[...], preferred_element_type=jnp.float32)
    s = jax.nn.sigmoid(s + b2_ref[...])                        # (TB, C)

    # per-channel gate applied in the native dtype
    o_ref[...] = x * s.astype(x.dtype)[:, :, None]


# ------------------ large-feature-map fallback: gate apply -------------------
def _gate_apply_kernel(x_ref, g_ref, o_ref):
    # x_ref: (1, C, T_HW); g_ref: (1, C, 1)
    o_ref[...] = x_ref[...] * g_ref[...]


def channel_se_layer(x_nchw, w1, b1, w2, b2, *, tile_budget_bytes=None):
    """x_nchw: (B, C, H, W); w1: (C_red, C); b1: (C_red,); w2: (C, C_red); b2: (C,)."""
    B, C, H, W = x_nchw.shape
    C_red = w1.shape[0]
    HW = H * W
    dtype = x_nchw.dtype
    itemsize = jnp.dtype(dtype).itemsize

    x = x_nchw.reshape(B, C, HW)                 # contiguous reshape, no copy
    per_elem = C * HW * itemsize                 # bytes of one batch element

    vmem_cap = _vmem_capacity_bytes()
    budget = (tile_budget_bytes if tile_budget_bytes is not None
              else max(_MIB, vmem_cap // 8))     # per-tile budget (double-buffered)
    vmem_limit = max(32 * _MIB, (vmem_cap * 3) // 4)

    # pre-transpose weights once in the wrapper (no in-kernel XLU transpose)
    w1t = jnp.transpose(w1)                      # (C, C_red)
    w2t = jnp.transpose(w2)                      # (C_red, C)
    b1_2d = b1.reshape(1, C_red)
    b2_2d = b2.reshape(1, C)
    param_bytes = int((w1t.size + w2t.size + b1_2d.size + b2_2d.size)
                      * jnp.dtype(w1.dtype).itemsize)

    if per_elem <= budget:
        # --------------------- fused single-pass path -----------------------
        tb_cap = max(1, budget // per_elem)
        # >= min(B, 4) grid steps: >= 2 steps per v7x TensorCore, and DMA of
        # the next tile / writeback of the previous overlap compute.
        tb_cap = min(tb_cap, max(1, B // min(B, 4)))
        TB = _largest_divisor_leq(B, tb_cap)
        grid = B // TB

        kernel = functools.partial(_se_kernel, inv_hw=1.0 / HW)
        cost = pl.CostEstimate(
            flops=2 * B * C * HW + 4 * B * C * C_red,
            transcendentals=B * C,
            bytes_accessed=2 * B * C * HW * itemsize + param_bytes,
        )
        out = pl.pallas_call(
            kernel,
            out_shape=jax.ShapeDtypeStruct((B, C, HW), dtype),
            grid_spec=pltpu.PrefetchScalarGridSpec(
                num_scalar_prefetch=0,
                grid=(grid,),
                in_specs=[
                    pl.BlockSpec((TB, C, HW), lambda b: (b, 0, 0)),
                    pl.BlockSpec((C, C_red), lambda b: (0, 0)),
                    pl.BlockSpec((1, C_red), lambda b: (0, 0)),
                    pl.BlockSpec((C_red, C), lambda b: (0, 0)),
                    pl.BlockSpec((1, C), lambda b: (0, 0)),
                ],
                out_specs=pl.BlockSpec((TB, C, HW), lambda b: (b, 0, 0)),
            ),
            compiler_params=pltpu.CompilerParams(
                dimension_semantics=("parallel",),
                vmem_limit_bytes=vmem_limit,
            ),
            cost_estimate=cost,
        )(x, w1t, b1_2d, w2t, b2_2d)
    else:
        # ------------- large-feature-map fallback (HW-tiled gate) -----------
        # Squeeze + excitation MLP in plain JAX (one bandwidth-optimal HBM
        # read of x), then an HW-tiled Pallas gate-apply.  Total HBM traffic
        # equals a fused two-pass kernel (the gate depends on the full-HW
        # mean, so x must be read twice either way).
        squeeze = jnp.mean(x.astype(jnp.float32), axis=2)             # (B, C)
        h = jax.nn.relu(squeeze @ w1t.astype(jnp.float32) + b1_2d)
        s = jax.nn.sigmoid(h @ w2t.astype(jnp.float32) + b2_2d)
        gate = s.astype(dtype).reshape(B, C, 1)

        lane_budget = max(1, budget // (C * itemsize))
        T_HW = max(128, (lane_budget // 128) * 128)
        # TODO(synk): if C is so large that a (1, C, 128) tile still exceeds
        # the VMEM budget, tile the channel axis as well.
        n_hw = pl.cdiv(HW, T_HW)

        cost = pl.CostEstimate(
            flops=B * C * HW,
            transcendentals=0,
            bytes_accessed=2 * B * C * HW * itemsize + B * C * itemsize,
        )
        out = pl.pallas_call(
            _gate_apply_kernel,
            out_shape=jax.ShapeDtypeStruct((B, C, HW), dtype),
            grid_spec=pltpu.PrefetchScalarGridSpec(
                num_scalar_prefetch=0,
                grid=(B, n_hw),
                in_specs=[
                    pl.BlockSpec((1, C, T_HW), lambda b, h: (b, 0, h)),
                    pl.BlockSpec((1, C, 1), lambda b, h: (b, 0, 0)),
                ],
                out_specs=pl.BlockSpec((1, C, T_HW), lambda b, h: (b, 0, h)),
            ),
            compiler_params=pltpu.CompilerParams(
                dimension_semantics=("parallel", "parallel"),
                vmem_limit_bytes=vmem_limit,
            ),
            cost_estimate=cost,
        )(x, gate)

    return out.reshape(B, C, H, W)


def _reference(x, w1, b1, w2, b2):
    B, C, H, W = x.shape
    squeeze = x.reshape(B, C, -1).mean(axis=2)
    h = jax.nn.relu(squeeze @ w1.T + b1)
    s = jax.nn.sigmoid(h @ w2.T + b2)
    return x * s[:, :, None, None]


if __name__ == "__main__":
    key = jax.random.PRNGKey(0)
    # num_channels=16, reduction_ratio=8; H=W=14 exercises a non-128-multiple
    # spatial size (lane-masked trailing stores); B=4 exercises grid batching.
    B, C, H, W = 4, 16, 14, 14
    r = 8
    C_red = C // r

    k_x, k_w1, k_b1, k_w2, k_b2 = jax.random.split(key, 5)
    x = jax.random.normal(k_x, (B, C, H, W), dtype=jnp.float32)
    # deterministic synthetic Linear params (shapes match nn.Linear)
    w1 = jax.random.normal(k_w1, (C_red, C), dtype=jnp.float32) * 0.1
    b1 = jax.random.normal(k_b1, (C_red,), dtype=jnp.float32) * 0.1
    w2 = jax.random.normal(k_w2, (C, C_red), dtype=jnp.float32) * 0.1
    b2 = jax.random.normal(k_b2, (C,), dtype=jnp.float32) * 0.1

    ref = _reference(x, w1, b1, w2, b2)

    # primary (fused single-pass) path
    out = jax.block_until_ready(channel_se_layer(x, w1, b1, w2, b2))
    assert out.shape == (B, C, H, W)
    assert jnp.allclose(out, ref, atol=1e-5, rtol=1e-5), "single-pass mismatch"

    # large-feature-map fallback path (forced with a tiny tile budget)
    out2 = jax.block_until_ready(
        channel_se_layer(x, w1, b1, w2, b2, tile_budget_bytes=4096))
    assert out2.shape == (B, C, H, W)
    assert jnp.allclose(out2, ref, atol=1e-5, rtol=1e-5), "fallback mismatch"

    print("KERNEL_OK")
</pallas_src>

<mosaic_0001>
module attributes {stable_mosaic.version = 11 : i64} {
  func.func @_se_kernel(%arg0: i32, %arg1: memref<1x16x196xf32, #tpu.memory_space<vmem>>, %arg2: memref<16x2xf32, #tpu.memory_space<vmem>>, %arg3: memref<1x2xf32, #tpu.memory_space<vmem>>, %arg4: memref<2x16xf32, #tpu.memory_space<vmem>>, %arg5: memref<1x16xf32, #tpu.memory_space<vmem>>, %arg6: memref<1x16x196xf32, #tpu.memory_space<vmem>>) attributes {dimension_semantics = [#tpu.dimension_semantics<parallel>], iteration_bounds = array<i64: 4>, scalar_prefetch = 0 : i64, scratch_operands = 0 : i64, tpu.core_type = #tpu.core_type<tc>, window_params = [{transform_indices = @transform_0, window_bounds = array<i64: 1, 16, 196>}, {pipeline_mode = #tpu.pipeline_mode<synchronous>, transform_indices = @transform_1, window_bounds = array<i64: 16, 2>}, {pipeline_mode = #tpu.pipeline_mode<synchronous>, transform_indices = @transform_2, window_bounds = array<i64: 1, 2>}, {pipeline_mode = #tpu.pipeline_mode<synchronous>, transform_indices = @transform_3, window_bounds = array<i64: 2, 16>}, {pipeline_mode = #tpu.pipeline_mode<synchronous>, transform_indices = @transform_4, window_bounds = array<i64: 1, 16>}, {transform_indices = @transform_5, window_bounds = array<i64: 1, 16, 196>}]} {
    %c0 = arith.constant 0 : index
    %c0_0 = arith.constant 0 : index
    %c0_1 = arith.constant 0 : index
    %0 = vector.load %arg1[%c0, %c0_0, %c0_1] : memref<1x16x196xf32, #tpu.memory_space<vmem>>, vector<1x16x196xf32>
    %cst = arith.constant dense<0.000000e+00> : vector<1x16xf32>
    %1 = vector.multi_reduction <add>, %0, %cst [2] : vector<1x16x196xf32> to vector<1x16xf32>
    %cst_2 = arith.constant 0.00510204071 : f32
    %2 = vector.broadcast %cst_2 : f32 to vector<1x16xf32>
    %3 = arith.mulf %1, %2 : vector<1x16xf32>
    %c0_3 = arith.constant 0 : index
    %c0_4 = arith.constant 0 : index
    %4 = vector.load %arg2[%c0_3, %c0_4] : memref<16x2xf32, #tpu.memory_space<vmem>>, vector<16x2xf32>
    %cst_5 = arith.constant dense<0.000000e+00> : vector<1x2xf32>
    %5 = tpu.matmul %3, %4, %cst_5 {dimension_numbers = #tpu.dot_dimension_numbers<[1], [0], [0], [1], [0, 0, 1, 1], [], []>} : vector<1x16xf32>, vector<16x2xf32>, vector<1x2xf32> -> vector<1x2xf32>
    %c0_6 = arith.constant 0 : index
    %c0_7 = arith.constant 0 : index
    %6 = vector.load %arg3[%c0_6, %c0_7] : memref<1x2xf32, #tpu.memory_space<vmem>>, vector<1x2xf32>
    %7 = arith.addf %5, %6 : vector<1x2xf32>
    %cst_8 = arith.constant 0.000000e+00 : f32
    %8 = vector.broadcast %cst_8 : f32 to vector<1x2xf32>
    %9 = arith.maximumf %7, %8 : vector<1x2xf32>
    %c0_9 = arith.constant 0 : index
    %c0_10 = arith.constant 0 : index
    %10 = vector.load %arg4[%c0_9, %c0_10] : memref<2x16xf32, #tpu.memory_space<vmem>>, vector<2x16xf32>
    %cst_11 = arith.constant dense<0.000000e+00> : vector<1x16xf32>
    %11 = tpu.matmul %9, %10, %cst_11 {dimension_numbers = #tpu.dot_dimension_numbers<[1], [0], [0], [1], [0, 0, 1, 1], [], []>} : vector<1x2xf32>, vector<2x16xf32>, vector<1x16xf32> -> vector<1x16xf32>
    %c0_12 = arith.constant 0 : index
    %c0_13 = arith.constant 0 : index
    %12 = vector.load %arg5[%c0_12, %c0_13] : memref<1x16xf32, #tpu.memory_space<vmem>>, vector<1x16xf32>
    %13 = arith.addf %11, %12 : vector<1x16xf32>
    %14 = arith.negf %13 : vector<1x16xf32>
    %15 = math.exp %14 : vector<1x16xf32>
    %cst_14 = arith.constant 1.000000e+00 : f32
    %16 = vector.broadcast %cst_14 : f32 to vector<1x16xf32>
    %17 = arith.addf %16, %15 : vector<1x16xf32>
    %18 = arith.divf %16, %17 : vector<1x16xf32>
    %19 = vector.shape_cast %18 : vector<1x16xf32> to vector<1x16x1xf32>
    %20 = vector.broadcast %19 : vector<1x16x1xf32> to vector<1x16x196xf32>
    %21 = arith.mulf %0, %20 : vector<1x16x196xf32>
    %c0_15 = arith.constant 0 : index
    %c0_16 = arith.constant 0 : index
    %c0_17 = arith.constant 0 : index
    %22 = vector.load %arg6[%c0_15, %c0_16, %c0_17] : memref<1x16x196xf32, #tpu.memory_space<vmem>>, vector<1x16x196xf32>
    tpu.vector_store %arg6[%c0_15, %c0_16, %c0_17], %21 {strides = array<i32>} : memref<1x16x196xf32, #tpu.memory_space<vmem>>, vector<1x16x196xf32>,
    return
  }
  func.func @transform_0(%arg0: i32) -> (i32, i32, i32) {
    %c0_i32 = arith.constant 0 : i32
    %c0_i32_0 = arith.constant 0 : i32
    %c0_i32_1 = arith.constant 0 : i32
    return %arg0, %c0_i32, %c0_i32_0 : i32, i32, i32
  }
  func.func @transform_1(%arg0: i32) -> (i32, i32) {
    %c0_i32 = arith.constant 0 : i32
    %c0_i32_0 = arith.constant 0 : i32
    %c0_i32_1 = arith.constant 0 : i32
    return %c0_i32, %c0_i32_0 : i32, i32
  }
  func.func @transform_2(%arg0: i32) -> (i32, i32) {
    %c0_i32 = arith.constant 0 : i32
    %c0_i32_0 = arith.constant 0 : i32
    %c0_i32_1 = arith.constant 0 : i32
    return %c0_i32, %c0_i32_0 : i32, i32
  }
  func.func @transform_3(%arg0: i32) -> (i32, i32) {
    %c0_i32 = arith.constant 0 : i32
    %c0_i32_0 = arith.constant 0 : i32
    %c0_i32_1 = arith.constant 0 : i32
    return %c0_i32, %c0_i32_0 : i32, i32
  }
  func.func @transform_4(%arg0: i32) -> (i32, i32) {
    %c0_i32 = arith.constant 0 : i32
    %c0_i32_0 = arith.constant 0 : i32
    %c0_i32_1 = arith.constant 0 : i32
    return %c0_i32, %c0_i32_0 : i32, i32
  }
  func.func @transform_5(%arg0: i32) -> (i32, i32, i32) {
    %c0_i32 = arith.constant 0 : i32
    %c0_i32_0 = arith.constant 0 : i32
    %c0_i32_1 = arith.constant 0 : i32
    return %arg0, %c0_i32, %c0_i32_0 : i32, i32, i32
  }
}

</mosaic_0001>

<bundles_post_ra>
// kernel: tpu_custom_call.1
= control target key start
LH: loop header
LB: loop body
LE: loop exit
PB: predicated region body
PF: predicated region fallthrough
CT: control target
= control target key end

     0   :  { %10 = vsyncpa [#allocation3], 0  ;;  %s975_s0 = inlined_call_operand.hbm [shape: f32[4,16,196], index: 0, kind: input, shape index: {}]   ;;  %s976_s1 = inlined_call_operand.vmem [shape: f32[16,2], index: 1, kind: input, shape index: {}]   ;;  %s977_s2 = inlined_call_operand.vmem [shape: f32[1,2], index: 2, kind: input, shape index: {}]   ;;  %s978_s3 = inlined_call_operand.vmem [shape: f32[2,16], index: 3, kind: input, shape index: {}]   ;;  %s979_s4 = inlined_call_operand.vmem [shape: f32[1,16], index: 4, kind: input, shape index: {}]   ;;  %s980_s5 = inlined_call_operand.hbm [shape: f32[4,16,196], index: 5, kind: output, shape index: {}]  }
   0x1   :  { %12 = vsyncpa [#allocation3 + $0x1], 0 }
   0x2   :  { %13 = vsyncpa [#allocation4], 0 }
   0x3   :  { %15 = vsyncpa [#allocation4 + $0x1], 0  ;;  %s776_s18 = smov 0   ;;  %s778_s19 = smov 0  }
   0x4   :  { %s780_s20 = smov 0   ;;  %s782_s21 = smov 0  }
   0x5 LB: > { %s797_s22 = sadd.s32 4294967295, %s735_s21   ;;  %s542_s23 = sadd.s32 4294967294, %s735_s21   ;;  %s735_s21 = sphi %s782_s21, %s992_s21   ;;  %s731_s20 = sphi %s780_s20, %s991_s20   ;;  %s727_s19 = sphi %s778_s19, %s990_s19   ;;  %s723_s18 = sphi %s776_s18, %s989_s18  }
   0x6   : > { %s801_s24 = sadd.s32 1, %s735_s21   ;;  %s28_s25 = sadd.s32 1, %s731_s20 }
   0x7   : > { %s25_s26 = ssub.s32 %s735_s21, %s801_s24  ;;  %p35_p0 = scmp.ne.s32.totalorder %s731_s20, %s727_s19 }
   0x8   : > { %p26_p1 = scmp.eq.s32.totalorder %s25_s26, 0  ;;  %p36_p2 = scmp.eq.s32.totalorder %s735_s21, 0 }
   0x9   : > { %p41_p3 = scmp.ne.s32.totalorder %s727_s19, %s723_s18  ;;  %p42_p4 = scmp.eq.s32.totalorder %s797_s22, 0 }
   0xa   : > { %s813_s27 = scalar_select %p26_p1, %s731_s20, %s28_s25  }
   0xb   : > { %p815_p5 = por %p36_p2, %p35_p0  ;;  %p819_p6 = por %p42_p4, %p41_p3 }
   0xc   : > { %p149_p7 = scmp.eq.s32.totalorder %s797_s22, 3  ;;  %p155_p8 = scmp.eq.s32.totalorder %s542_s23, 3 }
   0xd   : > { %p594_p9 = scmp.lt.s32.totalorder %s735_s21, 4  ;;  %s187_s7 = sand.u32 1, %s731_s20  }
   0xe   : > { %p825_p10 = por %p149_p7, %p35_p0  ;;  %p829_p11 = por %p155_p8, %p41_p3 }
   0xf   : > { %s560_s8 = sshll.u32 %s735_s21, 9  ;;  %s545_s9 = sshll.u32 %s187_s7, 5 }
  0x10   : > { %s984_s30 = scalar_select %p825_p10, 1, 0 }
  0x11   : > { %s985_s6 = scalar_select %p829_p11, 1, 0 }
  0x12   : > { %s838_s12 = scalar_lea.hbm %s975_s0, %s560_s8  ;;  %s191_s13 = scalar_lea.vmem [#allocation2], %s545_s9 }
  0x13   : > { %s198_s14 = sshll.u32 %s191_s13, 4  ;;  %p842_p12 = pnand %p594_p9, %p815_p5  ;;  %s846_s14 = int_to_ptr.vmem [resolvable:$true] %s198_s14 }
  0x14   : > { %s848_s16 = scalar_lea.sflag [#allocation3], %s187_s7  ;;  %s639_s17 = scalar_lea.hbm %s838_s12, 512 }
  0x15   : > { %p640_p13 = scmp.ne.s32.totalorder %s838_s12, %s639_s17  ;;  %p641_p0 = pneg %p842_p12 }
  0x16   : > { %s644_s26 = scalar_lea.hbm %s975_s0, 2048  ;;  %p645_p3 = scmp.lt.u32.totalorder %s838_s12, %s975_s0 }
  0x17   : > { %p642_p1 = pnand %p641_p0, %p640_p13  ;;  %p646_p4 = scmp.lt.u32.totalorder %s644_s26, %s639_s17 }
  0x18   : > { %p648_p7 = scmp.lt.u32.totalorder %s639_s17, %s838_s12 }
  0x19   : > { %p643_p2 = pneg %p642_p1  ;;  %p647_p5 = por %p646_p4, %p645_p3 }
  0x1b   : > { %p649_p8 = por %p648_p7, %p647_p5 }
  0x1d   : > { %p650_p9 = pnand %p649_p8, %p643_p2 }
  0x1f   : > { %653 = shalt.err (!%p650_p9)
}
  0x20   : > { %s654_s7 = scalar_lea.vmem %s846_s14, 512  ;;  %s737_s9 = smov [#allocation2]  }
  0x21   : > { %p655_p13 = scmp.ne.s32.totalorder %s846_s14, %s654_s7  ;;  %s659_s10 = sshll.u32 %s737_s9, 4  ;;  %s660_s10 = int_to_ptr.vmem [resolvable:$false] %s659_s10 }
  0x22   : > { %s661_s11 = scalar_lea.vmem %s660_s10, 1024  ;;  %p662_p10 = scmp.lt.s32.totalorder %s846_s14, %s660_s10 }
  0x23   : > { %p657_p1 = pnand %p655_p13, %p641_p0  ;;  %p663_p3 = scmp.lt.s32.totalorder %s661_s11, %s654_s7 }
  0x25   : > { %p658_p11 = pneg %p657_p1  ;;  %p664_p4 = por %p663_p3, %p662_p10 }
  0x27   : > { %p665_p5 = pnand %p664_p4, %p658_p11 }
  0x29   : > { %668 = shalt.err (!%p665_p5)
}
  0x2a   : > { %s738_s13 = smov 256   ;;  %s739_s17 = smov 16  }
  0x2b   : > { %589 = dma.hbm_to_vmem [thread:$0]  (!%p842_p12), %s838_s12, 512, %s846_s14, %s848_s16, %s738_s13, %s738_s13, %s739_s17  }
  0x2c   : > { %p548_p0 = scmp.ge.s32.totalorder %s735_s21, 1  ;;  %p206_p2 = scmp.lt.s32.totalorder %s735_s21, 5 }
  0x2e   : > { %p207_p7 = pnand %p548_p0, %p206_p2 }
  0x2f   : > { %s879_s23 = sand.u32 (!%p207_p7), 1, %s727_s19  }
  0x30   : > { %210 = sbr.rel (%p207_p7) target bundleno = 805 (0x325), region = 40  ;;  %s549_s25 = sshll.u32 (!%p207_p7), %s879_s23, 5 }
  0x31   : > { %s213_s26 = scalar_lea.sflag (!%p207_p7), [#allocation3], %s879_s23  ;;  %s216_s28 = scalar_lea.vmem (!%p207_p7), [#allocation2], %s549_s25 }
  0x37   : > { %714 = dma.done.wait (%p819_p6), %s213_s26, 512  }
  0x38   : > { %716 = vsyncadd (%p819_p6), %s213_s26, 4294966784  ;;  %vm247_vm0 = vcmask 556032   ;;  %v889_v0 = vld [vmem:[%s216_s28] sm:$0xff]  ;;  %v891_v1 = vld [vmem:[%s216_s28 + $0x8] sm:$0xff]  ;;  %v740_v11 = vmov 0.0|0.0   ;;  %vm741_vm1 = vmmov 0   ;;  %v263_v13 = vlaneseq }
  0x39   : > { %v248_v2 = vsel %vm247_vm0, %v891_v1, 0.0  ;;  %v895_v3 = vld [vmem:[%s216_s28 + $0x10] sm:$0xff]  ;;  %v897_v4 = vld [vmem:[%s216_s28 + $0x18] sm:$0xff]  ;;  %v258_v8 = vld [vmem:[%s976_s1] sm:$0xff]  ;;  %579 = vmatprep.subr.bf16.mxu0 %v740_v11  ;;  %v742_v12 = vmov 0.0   ;;  %vm274_vm2 = vcmask 130112  }
  0x3a   : > { %v249_v5 = vadd.f32 %v248_v2, %v889_v0  ;;  %v252_v6 = vsel %vm247_vm0, %v897_v4, 0.0  ;;  %v259_v9 = vld [vmem:[%s976_s1 + $0x8] sm:$0xff]  ;;  %571 = vmatprep.mubr.msk.f32.mxu0 %vm741_vm1, %v742_v12  ;;  %574 = vmatprep.subr.mxu1 %v742_v12  ;;  %v264_v14 = vand.u32 127, %v263_v13  ;;  %v266_v15 = vshrl.u32 %v263_v13, 7  ;;  %v350_v26 = vld [vmem:[%s978_s3] sm:$0x3] }
  0x3b   : > { %v253_v7 = vadd.f32 %v252_v6, %v895_v3  ;;  %v580_v10 = vpack.c.bf16 %v259_v9, %v258_v8  ;;  %576 = vmatprep.mubr.msk.f32.mxu1 %vm741_vm1, %v742_v12  ;;  %vm276_vm3 = vcmask 130048   ;;  %vm356_vm4 = vcmask 1041408   ;;  %v260_v27 = vld [vmem:[%s977_s2] sm:$0x1]  ;;  %s242_s13 = scalar_lea.vmem [#allocation5], %s549_s25  ;;  %s561_s26 = sshll.u32 %s797_s22, 9 }
  0x3c   : > { %250 = vadd.xlane.f32.xlu0 %v249_v5  ;;  %v269_v16 = vadd.s32 4294967288, %v264_v14  ;;  %v267_v18 = vsub.s32 %v264_v14, %v266_v15  ;;  %575 = vmatpush3.msk.msra.mxu1 %vm356_vm4, %v350_v26  ;;  %vm352_vm5 = vcmask 15360   ;;  %v351_v32 = vld [vmem:[%s979_s4] sm:$0x1]  ;;  %v438_v39 = vsub.s32 0, %v266_v15  ;;  %s469_s17 = sshll.u32 %s242_s13, 4  ;;  %s929_s25 = scalar_lea.hbm %s980_s5, %s561_s26  ;;  %s923_s17 = int_to_ptr.vmem [resolvable:$true] %s469_s17 }
  0x3d   : > { %581 = vmatpush3.bf16.msra.mxu0 %v580_v10  ;;  %s456_s22 = scalar_lea.sflag [#allocation4], %s879_s23  ;;  %s669_s12 = scalar_lea.vmem %s923_s17, 512 }
  0x3e   : > { %v272_v20 = vsub.s32 %v269_v16, %v266_v15  ;;  %p670_p6 = scmp.ne.s32.totalorder %s923_s17, %s669_s12  ;;  %p987_p10 = scmp.ne.s32.totalorder %s984_s30, 0 }
  0x3f   : > { %s743_s14 = smov [#allocation5]  }
  0x40   : > { %254 = vadd.xlane.f32.xlu0 %v253_v7  ;;  %p671_p11 = pnand %p670_p6, %p987_p10  ;;  %s673_s15 = sshll.u32 %s743_s14, 4  ;;  %s674_s15 = int_to_ptr.vmem [resolvable:$false] %s673_s15 }
  0x41   : > { %s675_s16 = scalar_lea.vmem %s674_s15, 1024  ;;  %p676_p8 = scmp.lt.s32.totalorder %s923_s17, %s674_s15 }
  0x42   : > { %p672_p12 = pneg %p671_p11  ;;  %p677_p9 = scmp.lt.s32.totalorder %s675_s16, %s669_s12 }
  0x44   : > { %p678_p13 = por %p677_p9, %p676_p8 }
  0x46   : > { %p679_p1 = pnand %p678_p13, %p672_p12 }
  0xc9   : > { %v251_v17 = vpop.xlane.xlu0 %250 }
  0xca   : > { %v256_v19 = vmul.f32 0.0051020407, %v251_v17 }
  0xcc   : > { %v268_v23 = vrot.slane %v256_v19, %v267_v18 }
  0xcd   : > { %v255_v21 = vpop.xlane.xlu0 %254 }
  0xce   : > { %v257_v22 = vmul.f32 0.0051020407, %v255_v21 }
  0xd0   : > { %v273_v24 = vrot.slane %v257_v22, %v272_v20 }
  0xd2   : > { %v275_v25 = vsel %vm274_vm2, %v273_v24, %v268_v23 }
  0xd3   : > { %572 = vmatmul.mubr.msk.f32.vlgmr.msra.gmra.mrb[0].mxu0 %vm276_vm3, %v275_v25 }
 0x1a6   : > { %v345_v28 = vpop.f32.mrb[0].mxu0 }
 0x1a7   : > { %v346_v29 = vadd.f32 %v345_v28, %v260_v27  ;;  %v573_v30 = vpop.f32.mrb[1].mxu0 }
 0x1a9   : > { %v349_v31 = vmax.f32 %v346_v29, 0.0 }
 0x1ab   : > { %577 = vmatmul.mubr.msk.f32.vlgmr.msra.gmra.mrb[0].mxu1 %vm352_vm5, %v349_v31 }
 0x27e   : > { %v426_v33 = vpop.f32.mrb[0].mxu1 }
 0x27f   : > { %v427_v34 = vadd.f32 %v426_v33, %v351_v32  ;;  %v578_v35 = vpop.f32.mrb[1].mxu1 }
 0x281   : > { %v554_v36 = vmul.f32 -1.442695, %v427_v34 }
 0x283   : > { %635 = vpow2.f32 %v554_v36 }
 0x28d   : > { %v636_v37 = vpop.eup %635 }
 0x28e   : > { %v433_v38 = vadd.f32 1.0, %v636_v37 }
 0x290   : > { %637 = vrcp.f32 %v433_v38 }
 0x29a   : > { %v638_v40 = vpop.eup %637 }
 0x29b   : > { %v439_v41 = vrot.slane %v638_v40, %v438_v39 }
 0x29d   : > { %441 = vbcast.lane.b32.xlu1 %v439_v41, 256 }
 0x2a1   : > { %445 = vbcast.lane.b32.xlu1 %v439_v41, 264 }
 0x30f   : > { %v442_v42 = vpop.permute.xlu1 %441 }
 0x310   : > { %v447_v43 = vmul.f32 %v442_v42, %v889_v0  ;;  %v448_v44 = vmul.f32 %v442_v42, %v891_v1 }
 0x312   : > { %451 = vst [vmem:[%s242_s13] sm:$0xff] %v447_v43  ;;  %452 = vst.msk [vmem:[%s242_s13 + $0x8] sm:$0xff] %vm247_vm0, %v448_v44 }
 0x313   : > { %v446_v45 = vpop.permute.xlu1 %445 }
 0x314   : > { %v449_v46 = vmul.f32 %v446_v45, %v895_v3  ;;  %v450_v47 = vmul.f32 %v446_v45, %v897_v4 }
 0x316   : > { %453 = vst [vmem:[%s242_s13 + $0x10] sm:$0xff] %v449_v46  ;;  %454 = vst.msk [vmem:[%s242_s13 + $0x18] sm:$0xff] %vm247_vm0, %v450_v47 }
 0x317   : > { %682 = shalt.err (!%p679_p1)
}
 0x318   : > { %s683_s8 = scalar_lea.hbm %s929_s25, 512  ;;  %s687_s10 = scalar_lea.hbm %s980_s5, 2048 }
 0x319   : > { %p684_p3 = scmp.ne.s32.totalorder %s929_s25, %s683_s8  ;;  %p688_p0 = scmp.lt.u32.totalorder %s929_s25, %s980_s5 }
 0x31a   : > { %p689_p2 = scmp.lt.u32.totalorder %s687_s10, %s683_s8  ;;  %p691_p6 = scmp.lt.u32.totalorder %s683_s8, %s929_s25 }
 0x31b   : > { %p685_p4 = pnand %p684_p3, %p987_p10 }
 0x31c   : > { %p690_p7 = por %p689_p2, %p688_p0 }
 0x31d   : > { %p686_p5 = pneg %p685_p4 }
 0x31e   : > { %p692_p11 = por %p691_p6, %p690_p7 }
 0x320   : > { %p693_p12 = pnand %p692_p11, %p686_p5 }
 0x322   : > { %696 = shalt.err (!%p693_p12)
}
 0x323   : > { %s744_s26 = smov 256   ;;  %s745_s28 = smov 16  }
 0x324   : > { %584 = dma.vmem_to_hbm [thread:$0]  (%p987_p10), %s923_s17, 512, %s929_s25, %s456_s22, %s744_s26, %s744_s26, %s745_s28  }
 0x325 PF: > { %p595_p8 = scmp.ge.s32.totalorder %s735_s21, 2  ;;  %s484_s29 = sand.u32 1, %s723_s18  }
 0x326   : > { %p988_p9 = scmp.ne.s32.totalorder %s985_s6, 0  ;;  %s485_s12 = scalar_lea.sflag [#allocation4], %s484_s29 }
 0x328   : > { %p591_p13 = pnand %p595_p8, %p988_p9 }
 0x32a   : > { %718 = dma.done.wait (!%p591_p13), %s485_s12, 512  }
 0x32b   : > { %720 = vsyncadd (!%p591_p13), %s485_s12, 4294966784  ;;  %p18_p1 = scmp.ge.s32.totalorder %s801_s24, 6   ;;  %s989_s18 = smov %s727_s19 }
 0x32c   : > { %s990_s19 = smov %s731_s20  ;;  %s991_s20 = smov %s813_s27 }
 0x32d   : > { %s992_s21 = smov %s801_s24  ;;  %20 = sbr.rel (!%p18_p1) target bundleno = 5 (0x5), region = 85 }
 0x334   :  { %490 = vsyncpa [#allocation3], 1 }
 0x335   :  { %492 = vsyncpa [#allocation3 + $0x1], 1 }
 0x336   :  { %493 = vsyncpa [#allocation4], 1 }
 0x337   :  { %495 = vsyncpa [#allocation4 + $0x1], 1 }

</bundles_post_ra>
